<compile_context>
chip_gen: v5e
topology: v5e:2x2
jax: 0.10.0
libtpu: 0.0.40
codegen_flags: <defaults>
</compile_context>

<pallas_src>
import math

import jax
import jax.numpy as jnp
from jax import lax
from jax.experimental import pallas as pl
from jax.experimental.pallas import tpu as pltpu


def _round_up(x, m):
    return ((x + m - 1) // m) * m


# ---------------------------------------------------------------------------
# Kernel
# ---------------------------------------------------------------------------
def _timestep_embedder_kernel(t_ref, freqs_ref, cond_ref, w1m_ref, b1_ref,
                              w2_ref, b2_ref, out_ref, h_ref):
    """Produces one output tile (Bp, tn).

    First-layer work is computed once (grid step 0) into the VMEM scratch
    `h_ref` and reused for every N tile; per-step work is a single MXU dot
    against the double-buffered w2 tile plus a bias add.
    """
    half_p = freqs_ref.shape[1]
    cc_p = cond_ref.shape[1]

    @pl.when(pl.program_id(0) == 0)
    def _():
        # ---- sinusoidal embedding args (f32 elementwise) --------------------
        arg = t_ref[...] * freqs_ref[...]                   # (Bp,1)*(1,half_p)
        sin_a = jnp.sin(arg).astype(w1m_ref.dtype)          # bf16 MXU operands
        cos_a = jnp.cos(arg).astype(w1m_ref.dtype)

        # ---- fused mlp[0] + cond_proj (concat-free split-weight dots) -------
        h = jnp.dot(sin_a, w1m_ref[:half_p, :],
                    preferred_element_type=jnp.float32)
        h = h + jnp.dot(cos_a, w1m_ref[half_p:2 * half_p, :],
                        preferred_element_type=jnp.float32)
        h = h + jnp.dot(cond_ref[...],
                        w1m_ref[2 * half_p:2 * half_p + cc_p, :],
                        preferred_element_type=jnp.float32)
        h = h + b1_ref[...]                                  # (Bp, F) f32

        # ---- exact (erf) GELU in f32 ----------------------------------------
        h = 0.5 * h * (1.0 + lax.erf(h * (1.0 / math.sqrt(2.0))))
        h_ref[...] = h.astype(h_ref.dtype)

    # ---- mlp[2] output tile: (Bp, F) @ (F, tn) + (1, tn) --------------------
    out_ref[...] = (jnp.dot(h_ref[...], w2_ref[...],
                            preferred_element_type=jnp.float32) + b2_ref[...])


# ---------------------------------------------------------------------------
# Module wrapper: one-time weight prep in __init__, per-call pad + kernel only.
# ---------------------------------------------------------------------------
class TimestepEmbedderPallas:
    def __init__(self, wc, w1, b1, w2, b2, *, hidden_size,
                 max_period=10000.0, downscale_freq_shift=0.0, scale=1.0,
                 weight_dtype=jnp.bfloat16,
                 single_tile_w2_bytes=8 << 20, block_n_fallback=1024):
        H, F = w1.shape
        Cc = wc.shape[0]
        O = w2.shape[1]
        assert hidden_size == H, (hidden_size, H)
        half = hidden_size // 2

        self.F, self.O, self.Cc = F, O, Cc
        self.weight_dtype = weight_dtype
        self._itemw = jnp.dtype(weight_dtype).itemsize

        # ---- static tiling decisions (once) --------------------------------
        # Segment rows padded to 16 (bf16 sublane pack) so in-kernel static
        # slices of the merged weight are tile-aligned.
        self.half_pad = _round_up(max(half, 1), 16)
        self.cc_pad = _round_up(max(Cc, 1), 16)

        O_pad128 = _round_up(O, 128)
        if F * O_pad128 * self._itemw <= single_tile_w2_bytes:
            tn = O_pad128                                   # single grid step
        else:                                               # large-O fallback
            tn = _round_up(min(block_n_fallback, O_pad128), 128)
        self.tn = tn
        self.O_pad = _round_up(O_pad128, tn)
        self.grid_n = self.O_pad // tn

        # ---- one-time weight preprocessing (device constants) --------------
        k = jnp.arange(half, dtype=jnp.float32)
        fr = scale * jnp.exp((-math.log(max_period)) * k /
                             (half - downscale_freq_shift))
        self.freqs = jnp.zeros((1, self.half_pad), jnp.float32).at[0, :half].set(fr)

        w1f = jnp.asarray(w1, jnp.float32)
        wcw1 = jnp.asarray(wc, jnp.float32) @ w1f           # (Cc, F), done ONCE
        K = 2 * self.half_pad + self.cc_pad
        w1m = jnp.zeros((K, F), weight_dtype)
        w1m = w1m.at[:half, :].set(w1f[:half, :].astype(weight_dtype))
        w1m = w1m.at[self.half_pad:self.half_pad + half, :].set(
            w1f[half:2 * half, :].astype(weight_dtype))     # odd-H pad row drops
        w1m = w1m.at[2 * self.half_pad:2 * self.half_pad + Cc, :].set(
            wcw1.astype(weight_dtype))
        self.w1m = w1m

        self.b1p = jnp.asarray(b1, jnp.float32).reshape(1, F)
        self.w2p = jnp.zeros((F, self.O_pad), weight_dtype).at[:, :O].set(
            jnp.asarray(w2, weight_dtype))
        self.b2p = jnp.zeros((1, self.O_pad), jnp.float32).at[0, :O].set(
            jnp.asarray(b2, jnp.float32).reshape(-1))

        self._fwd = jax.jit(self._forward)

    # ---- per-call work: pad tiny inputs, launch kernel ----------------------
    def _vmem_limit(self, Bp):
        resident = (Bp * 4 + self.half_pad * 4 + Bp * self.cc_pad * self._itemw
                    + self.w1m.size * self._itemw + self.F * 4)
        per_tile = (self.F * self.tn * self._itemw + self.tn * 4
                    + Bp * self.tn * 4)
        scratch = Bp * self.F * self._itemw
        need = 2 * resident + 2 * per_tile + scratch + (2 << 20)
        return int(min(max(need, 4 << 20), 48 << 20))       # safe on v7x (64 MiB)

    def _cost_estimate(self, Bp):
        flops = 2 * Bp * (2 * self.half_pad * self.F + self.cc_pad * self.F
                          + self.F * self.O_pad)
        transcendentals = Bp * (2 * self.half_pad + self.F)  # sin, cos, erf
        bytes_accessed = (self.w1m.size * self._itemw + self.w2p.size * self._itemw
                          + self.freqs.size * 4 + self.b1p.size * 4
                          + self.b2p.size * 4
                          + Bp * (1 + self.cc_pad) * 4 + Bp * self.O_pad * 4)
        return pl.CostEstimate(flops=flops, transcendentals=transcendentals,
                               bytes_accessed=bytes_accessed)

    def _forward(self, t, condition):
        B = t.shape[0]
        Bp = _round_up(max(B, 8), 8)                         # sublane-dense rows
        t2d = jnp.zeros((Bp, 1), jnp.float32).at[:B, 0].set(t.astype(jnp.float32))
        condp = jnp.zeros((Bp, self.cc_pad), self.weight_dtype).at[:B, :self.Cc].set(
            condition.astype(self.weight_dtype))

        tn, F = self.tn, self.F
        out_pad = pl.pallas_call(
            _timestep_embedder_kernel,
            out_shape=jax.ShapeDtypeStruct((Bp, self.O_pad), jnp.float32),
            grid=(self.grid_n,),
            in_specs=[
                pl.BlockSpec((Bp, 1), lambda j: (0, 0)),
                pl.BlockSpec((1, self.half_pad), lambda j: (0, 0)),
                pl.BlockSpec((Bp, self.cc_pad), lambda j: (0, 0)),
                pl.BlockSpec(self.w1m.shape, lambda j: (0, 0)),
                pl.BlockSpec((1, F), lambda j: (0, 0)),
                pl.BlockSpec((F, tn), lambda j: (0, j)),     # w2 tile (dbl-buffered)
                pl.BlockSpec((1, tn), lambda j: (0, j)),     # b2 tile
            ],
            out_specs=pl.BlockSpec((Bp, tn), lambda j: (0, j)),
            scratch_shapes=[pltpu.VMEM((Bp, F), self.weight_dtype)],
            compiler_params=pltpu.CompilerParams(
                dimension_semantics=("arbitrary",),          # h scratch reused over N
                vmem_limit_bytes=self._vmem_limit(Bp)),
            cost_estimate=self._cost_estimate(Bp),
        )(t2d, self.freqs, condp, self.w1m, self.b1p, self.w2p, self.b2p)

        return out_pad[:B, :self.O][:, None, :]              # drop pad, unsqueeze(1)

    def __call__(self, t, condition=None):
        if condition is None:
            condition = jnp.zeros((t.shape[0], self.Cc), jnp.float32)
        return self._fwd(t, condition)


# ---------------------------------------------------------------------------
# References for correctness checking.
# ---------------------------------------------------------------------------
def _reference_f32(t, condition, wc, w1, b1, w2, b2, *, hidden_size,
                   max_period=10000.0, downscale_freq_shift=0.0, scale=1.0):
    """Plain-JAX f32 reference mirroring the PyTorch forward exactly."""
    half = hidden_size // 2
    exponent = (-math.log(max_period)) * jnp.arange(half, dtype=jnp.float32)
    exponent = exponent / (half - downscale_freq_shift)
    freqs = jnp.exp(exponent)
    emb = scale * (t.astype(jnp.float32)[:, None] * freqs[None, :])
    emb = jnp.concatenate([jnp.sin(emb), jnp.cos(emb)], axis=-1)
    if hidden_size % 2 == 1:
        emb = jnp.pad(emb, ((0, 0), (0, 1)))
    emb = emb + condition @ wc
    h = emb @ w1 + b1.reshape(1, -1)
    h = 0.5 * h * (1.0 + lax.erf(h / math.sqrt(2.0)))
    out = h @ w2 + b2.reshape(1, -1)
    return out[:, None, :]


def _reference_matched(t, condition, wc, w1, b1, w2, b2, *, hidden_size,
                       max_period=10000.0):
    """Plain-JAX reference using the kernel's fused / bf16 math (tight check)."""
    half = hidden_size // 2
    freqs = jnp.exp((-math.log(max_period)) *
                    jnp.arange(half, dtype=jnp.float32) / half)
    arg = t.astype(jnp.float32)[:, None] * freqs[None, :]
    sin_a = jnp.sin(arg).astype(jnp.bfloat16)
    cos_a = jnp.cos(arg).astype(jnp.bfloat16)
    w1_sin = w1[:half].astype(jnp.bfloat16)
    w1_cos = w1[half:2 * half].astype(jnp.bfloat16)
    wcw1 = (wc @ w1).astype(jnp.bfloat16)
    h = (jnp.dot(sin_a, w1_sin, preferred_element_type=jnp.float32)
         + jnp.dot(cos_a, w1_cos, preferred_element_type=jnp.float32)
         + jnp.dot(condition.astype(jnp.bfloat16), wcw1,
                   preferred_element_type=jnp.float32)
         + b1.reshape(1, -1))
    h = 0.5 * h * (1.0 + lax.erf(h / math.sqrt(2.0)))
    out = (jnp.dot(h.astype(jnp.bfloat16), w2.astype(jnp.bfloat16),
                   preferred_element_type=jnp.float32)
           + b2.reshape(1, -1))
    return out[:, None, :]


if __name__ == "__main__":
    # hidden_size must equal frequency_embedding_size whenever condition is used
    # (required by the torch `t_freq + cond_proj(condition)` add).
    B = 2
    hidden_size = 256
    freq_size = 256
    cond_dim = 128
    out_size = 512

    key = jax.random.PRNGKey(0)
    k_t, k_c, k_wc, k_w1, k_b1, k_w2, k_b2 = jax.random.split(key, 7)

    t = jax.random.uniform(k_t, (B,), jnp.float32, 0.0, 1000.0)
    condition = jax.random.normal(k_c, (B, cond_dim), jnp.float32)

    # torch-Linear shaped parameters, stored transposed (in_features, out_features).
    wc = jax.random.normal(k_wc, (cond_dim, freq_size), jnp.float32) * 0.05
    w1 = jax.random.normal(k_w1, (hidden_size, freq_size), jnp.float32) * 0.05
    b1 = jax.random.normal(k_b1, (freq_size,), jnp.float32) * 0.05
    w2 = jax.random.normal(k_w2, (freq_size, out_size), jnp.float32) * 0.05
    b2 = jax.random.normal(k_b2, (out_size,), jnp.float32) * 0.05

    # Weight preprocessing happens ONCE here; forwards only pad t/condition.
    emb = TimestepEmbedderPallas(wc, w1, b1, w2, b2, hidden_size=hidden_size)
    out = jax.block_until_ready(emb(t, condition))
    assert out.shape == (B, 1, out_size), out.shape

    # Tight check against the same fused bf16 math in plain JAX.
    ref_m = _reference_matched(t, condition, wc, w1, b1, w2, b2,
                               hidden_size=hidden_size)
    err_m = float(jnp.max(jnp.abs(out - ref_m)))
    assert err_m < 5e-3, err_m

    # Loose check against the full-f32 torch-semantics reference.
    ref_f = _reference_f32(t, condition, wc, w1, b1, w2, b2,
                           hidden_size=hidden_size)
    err_f = float(jnp.max(jnp.abs(out - ref_f)))
    assert err_f < 5e-2, err_f

    # Also exercise the tiled large-O fallback (h computed once, reused per tile).
    emb_tiled = TimestepEmbedderPallas(wc, w1, b1, w2, b2, hidden_size=hidden_size,
                                       single_tile_w2_bytes=0, block_n_fallback=128)
    out_t = jax.block_until_ready(emb_tiled(t, condition))
    err_t = float(jnp.max(jnp.abs(out_t - out)))
    assert err_t < 1e-4, err_t

    print("KERNEL_OK")
</pallas_src>

<mosaic_0001>
module attributes {stable_mosaic.version = 11 : i64} {
  func.func @_timestep_embedder_kernel(%arg0: i32, %arg1: memref<8x1xf32, #tpu.memory_space<vmem>>, %arg2: memref<1x128xf32, #tpu.memory_space<vmem>>, %arg3: memref<8x128xbf16, #tpu.memory_space<vmem>>, %arg4: memref<384x256xbf16, #tpu.memory_space<vmem>>, %arg5: memref<1x256xf32, #tpu.memory_space<vmem>>, %arg6: memref<256x512xbf16, #tpu.memory_space<vmem>>, %arg7: memref<1x512xf32, #tpu.memory_space<vmem>>, %arg8: memref<8x512xf32, #tpu.memory_space<vmem>>, %arg9: memref<8x256xbf16, #tpu.memory_space<vmem>>) attributes {dimension_semantics = [#tpu.dimension_semantics<arbitrary>], iteration_bounds = array<i64: 1>, scalar_prefetch = 0 : i64, scratch_operands = 1 : i64, tpu.core_type = #tpu.core_type<tc>, window_params = [{pipeline_mode = #tpu.pipeline_mode<synchronous>, transform_indices = @transform_0, window_bounds = array<i64: 8, 1>}, {pipeline_mode = #tpu.pipeline_mode<synchronous>, transform_indices = @transform_1, window_bounds = array<i64: 1, 128>}, {pipeline_mode = #tpu.pipeline_mode<synchronous>, transform_indices = @transform_2, window_bounds = array<i64: 8, 128>}, {pipeline_mode = #tpu.pipeline_mode<synchronous>, transform_indices = @transform_3, window_bounds = array<i64: 384, 256>}, {pipeline_mode = #tpu.pipeline_mode<synchronous>, transform_indices = @transform_4, window_bounds = array<i64: 1, 256>}, {transform_indices = @transform_5, window_bounds = array<i64: 256, 512>}, {transform_indices = @transform_6, window_bounds = array<i64: 1, 512>}, {transform_indices = @transform_7, window_bounds = array<i64: 8, 512>}]} {
    %c0_i32 = arith.constant 0 : i32
    %0 = arith.cmpi eq, %arg0, %c0_i32 : i32
    %1 = arith.extui %0 : i1 to i32
    %c0_i32_0 = arith.constant 0 : i32
    %2 = arith.cmpi ne, %1, %c0_i32_0 : i32
    scf.if %2 {
      %c0_8 = arith.constant 0 : index
      %c0_9 = arith.constant 0 : index
      %10 = vector.load %arg1[%c0_8, %c0_9] : memref<8x1xf32, #tpu.memory_space<vmem>>, vector<8x1xf32>
      %c0_10 = arith.constant 0 : index
      %c0_11 = arith.constant 0 : index
      %11 = vector.load %arg2[%c0_10, %c0_11] : memref<1x128xf32, #tpu.memory_space<vmem>>, vector<1x128xf32>
      %12 = vector.broadcast %10 : vector<8x1xf32> to vector<8x128xf32>
      %13 = vector.broadcast %11 : vector<1x128xf32> to vector<8x128xf32>
      %14 = arith.mulf %12, %13 : vector<8x128xf32>
      %15 = math.sin %14 : vector<8x128xf32>
      %16 = arith.truncf %15 : vector<8x128xf32> to vector<8x128xbf16>
      %17 = math.cos %14 : vector<8x128xf32>
      %18 = arith.truncf %17 : vector<8x128xf32> to vector<8x128xbf16>
      %c0_12 = arith.constant 0 : index
      %c0_13 = arith.constant 0 : index
      %19 = vector.load %arg4[%c0_12, %c0_13] : memref<384x256xbf16, #tpu.memory_space<vmem>>, vector<128x256xbf16>
      %cst_14 = arith.constant dense<0.000000e+00> : vector<8x256xf32>
      %20 = tpu.matmul %16, %19, %cst_14 {dimension_numbers = #tpu.dot_dimension_numbers<[1], [0], [0], [1], [0, 0, 1, 1], [], []>} : vector<8x128xbf16>, vector<128x256xbf16>, vector<8x256xf32> -> vector<8x256xf32>
      %c128 = arith.constant 128 : index
      %c0_15 = arith.constant 0 : index
      %21 = vector.load %arg4[%c128, %c0_15] : memref<384x256xbf16, #tpu.memory_space<vmem>>, vector<128x256xbf16>
      %cst_16 = arith.constant dense<0.000000e+00> : vector<8x256xf32>
      %22 = tpu.matmul %18, %21, %cst_16 {dimension_numbers = #tpu.dot_dimension_numbers<[1], [0], [0], [1], [0, 0, 1, 1], [], []>} : vector<8x128xbf16>, vector<128x256xbf16>, vector<8x256xf32> -> vector<8x256xf32>
      %23 = arith.addf %20, %22 : vector<8x256xf32>
      %c0_17 = arith.constant 0 : index
      %c0_18 = arith.constant 0 : index
      %24 = vector.load %arg3[%c0_17, %c0_18] : memref<8x128xbf16, #tpu.memory_space<vmem>>, vector<8x128xbf16>
      %c256 = arith.constant 256 : index
      %c0_19 = arith.constant 0 : index
      %25 = vector.load %arg4[%c256, %c0_19] : memref<384x256xbf16, #tpu.memory_space<vmem>>, vector<128x256xbf16>
      %cst_20 = arith.constant dense<0.000000e+00> : vector<8x256xf32>
      %26 = tpu.matmul %24, %25, %cst_20 {dimension_numbers = #tpu.dot_dimension_numbers<[1], [0], [0], [1], [0, 0, 1, 1], [], []>} : vector<8x128xbf16>, vector<128x256xbf16>, vector<8x256xf32> -> vector<8x256xf32>
      %27 = arith.addf %23, %26 : vector<8x256xf32>
      %c0_21 = arith.constant 0 : index
      %c0_22 = arith.constant 0 : index
      %28 = vector.load %arg5[%c0_21, %c0_22] : memref<1x256xf32, #tpu.memory_space<vmem>>, vector<1x256xf32>
      %29 = vector.broadcast %28 : vector<1x256xf32> to vector<8x256xf32>
      %30 = arith.addf %27, %29 : vector<8x256xf32>
      %cst_23 = arith.constant 5.000000e-01 : f32
      %31 = vector.broadcast %cst_23 : f32 to vector<8x256xf32>
      %32 = arith.mulf %31, %30 : vector<8x256xf32>
      %cst_24 = arith.constant 0.707106769 : f32
      %33 = vector.broadcast %cst_24 : f32 to vector<8x256xf32>
      %34 = arith.mulf %30, %33 : vector<8x256xf32>
      %35 = math.erf %34 : vector<8x256xf32>
      %cst_25 = arith.constant 1.000000e+00 : f32
      %36 = vector.broadcast %cst_25 : f32 to vector<8x256xf32>
      %37 = arith.addf %36, %35 : vector<8x256xf32>
      %38 = arith.mulf %32, %37 : vector<8x256xf32>
      %39 = arith.truncf %38 : vector<8x256xf32> to vector<8x256xbf16>
      %c0_26 = arith.constant 0 : index
      %c0_27 = arith.constant 0 : index
      %40 = vector.load %arg9[%c0_26, %c0_27] : memref<8x256xbf16, #tpu.memory_space<vmem>>, vector<8x256xbf16>
      tpu.vector_store %arg9[%c0_26, %c0_27], %39 {strides = array<i32>} : memref<8x256xbf16, #tpu.memory_space<vmem>>, vector<8x256xbf16>,
    } else {
    }
    %c0 = arith.constant 0 : index
    %c0_1 = arith.constant 0 : index
    %3 = vector.load %arg9[%c0, %c0_1] : memref<8x256xbf16, #tpu.memory_space<vmem>>, vector<8x256xbf16>
    %c0_2 = arith.constant 0 : index
    %c0_3 = arith.constant 0 : index
    %4 = vector.load %arg6[%c0_2, %c0_3] : memref<256x512xbf16, #tpu.memory_space<vmem>>, vector<256x512xbf16>
    %cst = arith.constant dense<0.000000e+00> : vector<8x512xf32>
    %5 = tpu.matmul %3, %4, %cst {dimension_numbers = #tpu.dot_dimension_numbers<[1], [0], [0], [1], [0, 0, 1, 1], [], []>} : vector<8x256xbf16>, vector<256x512xbf16>, vector<8x512xf32> -> vector<8x512xf32>
    %c0_4 = arith.constant 0 : index
    %c0_5 = arith.constant 0 : index
    %6 = vector.load %arg7[%c0_4, %c0_5] : memref<1x512xf32, #tpu.memory_space<vmem>>, vector<1x512xf32>
    %7 = vector.broadcast %6 : vector<1x512xf32> to vector<8x512xf32>
    %8 = arith.addf %5, %7 : vector<8x512xf32>
    %c0_6 = arith.constant 0 : index
    %c0_7 = arith.constant 0 : index
    %9 = vector.load %arg8[%c0_6, %c0_7] : memref<8x512xf32, #tpu.memory_space<vmem>>, vector<8x512xf32>
    tpu.vector_store %arg8[%c0_6, %c0_7], %8 {strides = array<i32>} : memref<8x512xf32, #tpu.memory_space<vmem>>, vector<8x512xf32>,
    return
  }
  func.func @transform_0(%arg0: i32) -> (i32, i32) {
    %c0_i32 = arith.constant 0 : i32
    %c0_i32_0 = arith.constant 0 : i32
    %c0_i32_1 = arith.constant 0 : i32
    return %c0_i32, %c0_i32_0 : i32, i32
  }
  func.func @transform_1(%arg0: i32) -> (i32, i32) {
    %c0_i32 = arith.constant 0 : i32
    %c0_i32_0 = arith.constant 0 : i32
    %c0_i32_1 = arith.constant 0 : i32
    return %c0_i32, %c0_i32_0 : i32, i32
  }
  func.func @transform_2(%arg0: i32) -> (i32, i32) {
    %c0_i32 = arith.constant 0 : i32
    %c0_i32_0 = arith.constant 0 : i32
    %c0_i32_1 = arith.constant 0 : i32
    return %c0_i32, %c0_i32_0 : i32, i32
  }
  func.func @transform_3(%arg0: i32) -> (i32, i32) {
    %c0_i32 = arith.constant 0 : i32
    %c0_i32_0 = arith.constant 0 : i32
    %c0_i32_1 = arith.constant 0 : i32
    return %c0_i32, %c0_i32_0 : i32, i32
  }
  func.func @transform_4(%arg0: i32) -> (i32, i32) {
    %c0_i32 = arith.constant 0 : i32
    %c0_i32_0 = arith.constant 0 : i32
    %c0_i32_1 = arith.constant 0 : i32
    return %c0_i32, %c0_i32_0 : i32, i32
  }
  func.func @transform_5(%arg0: i32) -> (i32, i32) {
    %c0_i32 = arith.constant 0 : i32
    %c0_i32_0 = arith.constant 0 : i32
    return %c0_i32, %arg0 : i32, i32
  }
  func.func @transform_6(%arg0: i32) -> (i32, i32) {
    %c0_i32 = arith.constant 0 : i32
    %c0_i32_0 = arith.constant 0 : i32
    return %c0_i32, %arg0 : i32, i32
  }
  func.func @transform_7(%arg0: i32) -> (i32, i32) {
    %c0_i32 = arith.constant 0 : i32
    %c0_i32_0 = arith.constant 0 : i32
    return %c0_i32, %arg0 : i32, i32
  }
}

</mosaic_0001>

<bundles_post_ra>
// kernel: _forward.1
= control target key start
LH: loop header
LB: loop body
LE: loop exit
PB: predicated region body
PF: predicated region fallthrough
CT: control target
= control target key end

     0   :  { %12 = vsyncpa [#allocation4], 0  ;;  %s2313_s0 = inlined_call_operand.vmem [shape: f32[8,1], index: 0, kind: input, shape index: {}]   ;;  %s2314_s1 = inlined_call_operand.vmem [shape: f32[1,128], index: 1, kind: input, shape index: {}]   ;;  %s2315_s2 = inlined_call_operand.vmem [shape: bf16[8,128], index: 2, kind: input, shape index: {}]   ;;  %s2316_s3 = inlined_call_operand.hbm [shape: bf16[384,256], index: 3, kind: input, shape index: {}]   ;;  %s2317_s4 = inlined_call_operand.vmem [shape: f32[1,256], index: 4, kind: input, shape index: {}]   ;;  %s2318_s5 = inlined_call_operand.hbm [shape: bf16[256,512], index: 5, kind: input, shape index: {}]   ;;  %s2319_s6 = inlined_call_operand.vmem [shape: f32[1,512], index: 6, kind: input, shape index: {}]   ;;  %s2320_s7 = inlined_call_operand.vmem [shape: f32[8,512], index: 7, kind: output, shape index: {}]  }
   0x1   :  { %s24_s26 = sshll.u32 %s2316_s3, 4  ;;  %s25_s26 = int_to_ptr.hbm [resolvable:$true] %s24_s26 }
   0x2   :  { %13 = vsyncpa [#allocation6], 0  ;;  %s2006_s27 = smov [#allocation3]   ;;  %s39_s8 = sshll.u32 %s2318_s5, 4  ;;  %s40_s8 = int_to_ptr.hbm [resolvable:$true] %s39_s8 }
   0x3   :  { %s26_s28 = sshll.u32 %s2006_s27, 4  ;;  %s2007_s9 = smov 128   ;;  %s27_s28 = int_to_ptr.vmem [resolvable:$true] %s26_s28 }
   0x4   :  { %s2008_s10 = smov 8   ;;  %s2009_s11 = smov [#allocation5]  }
   0x5   :  { %32 = dma.hbm_to_vmem [thread:$0]  %s25_s26, 6144, %s27_s28, [#allocation4], %s2007_s9, %s2007_s9, %s2008_s10  }
   0x6   :  { %s41_s12 = sshll.u32 %s2009_s11, 4  ;;  %s2010_s13 = smov 256   ;;  %s42_s12 = int_to_ptr.vmem [resolvable:$true] %s41_s12 }
   0x7   :  { %s2011_s14 = smov 16  }
   0x8   :  { %47 = dma.hbm_to_vmem [thread:$0]  %s40_s8, 8192, %s42_s12, [#allocation6], %s2010_s13, %s2010_s13, %s2011_s14  }
   0x9   :  { %2002 = dma.done.wait [#allocation4], 6144  }
   0xa   :  { %2003 = vsyncadd [#allocation4], 4294961152 }
   0xb   :  { %2004 = dma.done.wait [#allocation6], 8192  }
   0xc   :  { %2005 = vsyncadd [#allocation6], 4294959104  ;;  %v2012_v0 = vmov 0   ;;  %v62_v1 = vld [vmem:[%s2313_s0] sm:$0xff]  ;;  %v1431_v2 = vld [vmem:[#allocation3 + $0xf0] sm:$0xf] }
   0xd   :  { %1948 = vset.pattern.permute.xlu0 %v2012_v0  ;;  %v1854_v3 = vld [vmem:[#allocation3 + $0xf4] sm:$0xf0]  ;;  %v1853_v4 = vld [vmem:[#allocation3 + $0xf4] sm:$0xf]  ;;  %v1433_v6 = vld [vmem:[#allocation3 + $0xf8] sm:$0xf0] }
   0xe   :  { %66 = vperm.xlu0 %1948, %v62_v1   ;;  %v1432_v5 = vor.u32 %v1854_v3, %v1431_v2  ;;  %v1423_v7 = vld [vmem:[#allocation3 + $0xe0] sm:$0xf]  ;;  %v1852_v8 = vld [vmem:[#allocation3 + $0xe4] sm:$0xf0]  ;;  %v1436_v9 = vor.u32 %v1853_v4, %v1433_v6  ;;  %v1851_v10 = vld [vmem:[#allocation3 + $0xe4] sm:$0xf] }
   0xf   :  { %v1425_v11 = vld [vmem:[#allocation3 + $0xe8] sm:$0xf0]  ;;  %v1424_v12 = vor.u32 %v1852_v8, %v1423_v7  ;;  %v1415_v14 = vld [vmem:[#allocation3 + $0xd0] sm:$0xf]  ;;  %v1850_v15 = vld [vmem:[#allocation3 + $0xd4] sm:$0xf0] }
  0x10   :  { %496 = vmatpush.bf16.msra.mxu0 %v1432_v5  ;;  %509 = vmatpush.bf16.msra.mxu1 %v1436_v9  ;;  %v1428_v13 = vor.u32 %v1851_v10, %v1425_v11  ;;  %v1849_v16 = vld [vmem:[#allocation3 + $0xd4] sm:$0xf]  ;;  %v1417_v17 = vld [vmem:[#allocation3 + $0xd8] sm:$0xf0]  ;;  %v1495_v18 = vld [vmem:[#allocation3 + $0x70] sm:$0xf]  ;;  %v1416_v24 = vor.u32 %v1850_v15, %v1415_v14 }
  0x11   :  { %v1838_v19 = vld [vmem:[#allocation3 + $0x74] sm:$0xf0]  ;;  %v1949_v20 = vld [vmem:[%s2314_s1] ss:$0 sm:$0xff]  ;;  %v1837_v22 = vld [vmem:[#allocation3 + $0x74] sm:$0xf]  ;;  %v1420_v28 = vor.u32 %v1849_v16, %v1417_v17 }
  0x12   :  { %v1496_v21 = vor.u32 %v1838_v19, %v1495_v18  ;;  %v1497_v23 = vld [vmem:[#allocation3 + $0x78] sm:$0xf0]  ;;  %v1407_v25 = vld [vmem:[#allocation3 + $0xc0] sm:$0xf]  ;;  %v1848_v26 = vld [vmem:[#allocation3 + $0xc4] sm:$0xf0] }
  0x13   :  { %v1500_v27 = vor.u32 %v1837_v22, %v1497_v23  ;;  %v1487_v29 = vld [vmem:[#allocation3 + $0x60] sm:$0xf]  ;;  %v1836_v30 = vld [vmem:[#allocation3 + $0x64] sm:$0xf0]  ;;  %v1835_v31 = vld [vmem:[#allocation3 + $0x64] sm:$0xf]  ;;  %v1408_v41 = vor.u32 %v1848_v26, %v1407_v25 }
  0x14   :  { %497 = vmatpush.bf16.msra.mxu0 %v1424_v12  ;;  %510 = vmatpush.bf16.msra.mxu1 %v1428_v13  ;;  %v1847_v33 = vld [vmem:[#allocation3 + $0xc4] sm:$0xf]  ;;  %v1409_v34 = vld [vmem:[#allocation3 + $0xc8] sm:$0xf0]  ;;  %v1488_v35 = vor.u32 %v1836_v30, %v1487_v29  ;;  %v1399_v38 = vld [vmem:[#allocation3 + $0xb0] sm:$0xf] }
  0x15   :  { %602 = vmatpush.bf16.msra.mxu2 %v1496_v21  ;;  %615 = vmatpush.bf16.msra.mxu3 %v1500_v27  ;;  %v1489_v36 = vld [vmem:[#allocation3 + $0x68] sm:$0xf0]  ;;  %v1479_v40 = vld [vmem:[#allocation3 + $0x50] sm:$0xf]  ;;  %v1834_v42 = vld [vmem:[#allocation3 + $0x54] sm:$0xf0]  ;;  %v1412_v47 = vor.u32 %v1847_v33, %v1409_v34 }
  0x16   :  { %v1492_v39 = vor.u32 %v1835_v31, %v1489_v36  ;;  %v1833_v43 = vld [vmem:[#allocation3 + $0x54] sm:$0xf]  ;;  %v1481_v44 = vld [vmem:[#allocation3 + $0x58] sm:$0xf0]  ;;  %v1846_v48 = vld [vmem:[#allocation3 + $0xb4] sm:$0xf0]  ;;  %v1480_v49 = vor.u32 %v1834_v42, %v1479_v40 }
  0x17   :  { %v1845_v50 = vld [vmem:[#allocation3 + $0xb4] sm:$0xf]  ;;  %v1401_v51 = vld [vmem:[#allocation3 + $0xb8] sm:$0xf0]  ;;  %v1484_v52 = vor.u32 %v1833_v43, %v1481_v44  ;;  %v1391_v55 = vld [vmem:[#allocation3 + $0xa0] sm:$0xf]  ;;  %v1400_v58 = vor.u32 %v1846_v48, %v1399_v38 }
  0x18   :  { %498 = vmatpush.bf16.msra.mxu0 %v1416_v24  ;;  %511 = vmatpush.bf16.msra.mxu1 %v1420_v28  ;;  %v1844_v56 = vld [vmem:[#allocation3 + $0xa4] sm:$0xf0]  ;;  %v1471_v57 = vld [vmem:[#allocation3 + $0x40] sm:$0xf]  ;;  %v1831_v60 = vld [vmem:[#allocation3 + $0x44] sm:$0xf]  ;;  %v1404_v63 = vor.u32 %v1845_v50, %v1401_v51 }
  0x19   :  { %603 = vmatpush.bf16.msra.mxu2 %v1488_v35  ;;  %616 = vmatpush.bf16.msra.mxu3 %v1492_v39  ;;  %v1832_v59 = vld [vmem:[#allocation3 + $0x44] sm:$0xf0]  ;;  %v1473_v61 = vld [vmem:[#allocation3 + $0x48] sm:$0xf0]  ;;  %v1843_v1 = vld [vmem:[#allocation3 + $0xa4] sm:$0xf]  ;;  %v1392_v17 = vor.u32 %v1844_v56, %v1391_v55 }
  0x1a   :  { %v1393_v2 = vld [vmem:[#allocation3 + $0xa8] sm:$0xf0]  ;;  %v1472_v3 = vor.u32 %v1832_v59, %v1471_v57  ;;  %v2078_v4 = vld [vmem:[#allocation3 + $0x90] sm:$0xf]  ;;  %v2080_v5 = vld [vmem:[#allocation3 + $0x94] sm:$0xf0]  ;;  %v1476_v8 = vor.u32 %v1831_v60, %v1473_v61 }
  0x1b   :  { %v2082_v6 = vld [vmem:[#allocation3 + $0x94] sm:$0xf]  ;;  %v2084_v7 = vld [vmem:[#allocation3 + $0x98] sm:$0xf0]  ;;  %v1463_v9 = vld [vmem:[#allocation3 + $0x30] sm:$0xf]  ;;  %v1396_v21 = vor.u32 %v1843_v1, %v1393_v2  ;;  %v1384_v30 = vor.u32 %v2080_v5, %v2078_v4 }
  0x1c   :  { %499 = vmatpush.bf16.msra.mxu0 %v1408_v41  ;;  %512 = vmatpush.bf16.msra.mxu1 %v1412_v47  ;;  %v2086_v12 = vld [vmem:[#allocation3 + $0x80] sm:$0xf]  ;;  %v2088_v13 = vld [vmem:[#allocation3 + $0x84] sm:$0xf0]  ;;  %v2090_v14 = vld [vmem:[#allocation3 + $0x84] sm:$0xf]  ;;  %v1388_v31 = vor.u32 %v2082_v6, %v2084_v7 }
  0x1d   :  { %604 = vmatpush.bf16.msra.mxu2 %v1480_v49  ;;  %617 = vmatpush.bf16.msra.mxu3 %v1484_v52  ;;  %v1830_v15 = vld [vmem:[#allocation3 + $0x34] sm:$0xf0]  ;;  %v1829_v16 = vld [vmem:[#allocation3 + $0x34] sm:$0xf]  ;;  %v2092_v18 = vld [vmem:[#allocation3 + $0x88] sm:$0xf0]  ;;  %v1376_v35 = vor.u32 %v2088_v13, %v2086_v12 }
  0x1e   :  { %v1465_v19 = vld [vmem:[#allocation3 + $0x38] sm:$0xf0]  ;;  %v1464_v22 = vor.u32 %v1830_v15, %v1463_v9  ;;  %v2096_v23 = vld [vmem:[#allocation3 + $0x174] sm:$0xf0]  ;;  %v2098_v24 = vld [vmem:[#allocation3 + $0x174] sm:$0xf]  ;;  %v1380_v36 = vor.u32 %v2090_v14, %v2092_v18 }
  0x1f   :  { %v1468_v26 = vor.u32 %v1829_v16, %v1465_v19  ;;  %v2100_v27 = vld [vmem:[#allocation3 + $0x178] sm:$0xf0]  ;;  %v1455_v28 = vld [vmem:[#allocation3 + $0x20] sm:$0xf]  ;;  %v1827_v42 = vld [vmem:[#allocation3 + $0x24] sm:$0xf] }
  0x20   :  { %500 = vmatpush.bf16.msra.mxu0 %v1400_v58  ;;  %513 = vmatpush.bf16.msra.mxu1 %v1404_v63  ;;  %v1564_v40 = vor.u32 %v2098_v24, %v2100_v27  ;;  %v1457_v43 = vld [vmem:[#allocation3 + $0x28] sm:$0xf0]  ;;  %v2013_v44 = vmov 683565275   ;;  %v2014_v47 = vmov 2475754826  }
  0x21   :  { %605 = vmatpush.bf16.msra.mxu2 %v1472_v3  ;;  %618 = vmatpush.bf16.msra.mxu3 %v1476_v8  ;;  %v2015_v49 = vmov 2131351028   ;;  %v2016_v51 = vmov 2102212464   ;;  %v2017_v56 = vmov 920167782   ;;  %v1460_v63 = vor.u32 %v1827_v42, %v1457_v43 }
  0x22   :  { %v1447_v58 = vld [vmem:[#allocation3 + $0x10] sm:$0xf]  ;;  %v1826_v59 = vld [vmem:[#allocation3 + $0x14] sm:$0xf0]  ;;  %v2018_v61 = vmov 1326507024  }
  0x23   :  { %v1825_v1 = vld [vmem:[#allocation3 + $0x14] sm:$0xf]  ;;  %v1449_v2 = vld [vmem:[#allocation3 + $0x18] sm:$0xf0]  ;;  %v1551_v7 = vld [vmem:[#allocation3 + $0x160] sm:$0xf]  ;;  %v1448_v12 = vor.u32 %v1826_v59, %v1447_v58 }
  0x24   :  { %501 = vmatpush.bf16.msra.mxu0 %v1392_v17  ;;  %514 = vmatpush.bf16.msra.mxu1 %v1396_v21  ;;  %v1868_v8 = vld [vmem:[#allocation3 + $0x164] sm:$0xf0]  ;;  %v1452_v14 = vor.u32 %v1825_v1, %v1449_v2  ;;  %v1439_v15 = vld [vmem:[#allocation3] sm:$0xf]  ;;  %v1823_v21 = vld [vmem:[#allocation3 + $0x4] sm:$0xf] }
  0x25   :  { %606 = vmatpush.bf16.msra.mxu2 %v1464_v22  ;;  %619 = vmatpush.bf16.msra.mxu3 %v1468_v26  ;;  %v1824_v16 = vld [vmem:[#allocation3 + $0x4] sm:$0xf0]  ;;  %v1441_v22 = vld [vmem:[#allocation3 + $0x8] sm:$0xf0]  ;;  %v1552_v24 = vor.u32 %v1868_v8, %v1551_v7  ;;  %v1543_v26 = vld [vmem:[#allocation3 + $0x150] sm:$0xf] }
  0x26   :  { %v1866_v27 = vld [vmem:[#allocation3 + $0x154] sm:$0xf0]  ;;  %v1535_v43 = vld [vmem:[#allocation3 + $0x140] sm:$0xf] }
  0x27   :  { %v1544_v42 = vor.u32 %v1866_v27, %v1543_v26 }
  0x28   :  { %502 = vmatpush.bf16.msra.mxu0 %v1384_v30  ;;  %515 = vmatpush.bf16.msra.mxu1 %v1388_v31  ;;  %v1545_v30 = vld [vmem:[#allocation3 + $0x158] sm:$0xf0]  ;;  %v1444_v31 = vor.u32 %v1823_v21, %v1441_v22 }
  0x29   :  { %620 = vmatpush.bf16.msra.mxu3 %v1460_v63 }
  0x2c   :  { %503 = vmatpush.bf16.msra.mxu0 %v1376_v35  ;;  %516 = vmatpush.bf16.msra.mxu1 %v1380_v36 }
  0x2d   :  { %621 = vmatpush.bf16.msra.mxu3 %v1452_v14 }
  0x30   :  { %738 = vmatpush.bf16.msrb.mxu1 %v1564_v40 }
  0x31   :  { %622 = vmatpush.bf16.msra.mxu3 %v1444_v31 }
  0x80   :  { %v67_v32 = vpop.permute.xlu0 %66 }
  0x81   :  { %v2072_v37 = vmul.f32 %v1949_v20, %v67_v32  ;;  %v2094_v20 = vld [vmem:[#allocation3 + $0x170] sm:$0xf]  ;;  %v1828_v32 = vld [vmem:[#allocation3 + $0x24] sm:$0xf0] }
  0x82   :  { %v1560_v39 = vor.u32 %v2096_v23, %v2094_v20  ;;  %v1456_v41 = vor.u32 %v1828_v32, %v1455_v28  ;;  %v1440_v28 = vor.u32 %v1824_v16, %v1439_v15 }
  0x83   :  { %v73_v45 = vand.u32 2147483647, %v2072_v37  ;;  %v76_v46 = vand.u32 2139095040, %v2072_v37  ;;  %vm75_vm12 = vcmp.lt.s32.totalorder %v2072_v37, 0 }
  0x84   :  { %607 = vmatpush.bf16.msra.mxu2 %v1456_v41  ;;  %725 = vmatpush.bf16.msrb.mxu0 %v1560_v39 }
  0x85   :  { %v77_v53 = vshrl.u32 %v76_v46, 23  ;;  %v80_v54 = vand.u32 8388607, %v73_v45  ;;  %vm2180_vm13 = vcmp.le.f32.partialorder %v73_v45, 0.7853982 }
  0x86   :  { %v1505_v45 = vld [vmem:[#allocation3 + $0x108] sm:$0xf0] }
  0x87   :  { %v1367_v62 = vadd.s32 4294967169, %v77_v53  ;;  %v81_v10 = vor.u32 8388608, %v80_v54 }
  0x88   :  { %608 = vmatpush.bf16.msra.mxu2 %v1448_v12  ;;  %726 = vmatpush.bf16.msrb.mxu0 %v1552_v24 }
  0x89   :  { %v83_v11 = vadd.s32 1, %v1367_v62  ;;  %v2108_v34 = vshll.u32 %v81_v10, 8  ;;  %v1867_v10 = vld [vmem:[#allocation3 + $0x164] sm:$0xf] }
  0x8b   :  { %vm84_vm0 = vcmp.gt.s32.totalorder %v83_v11, 0  ;;  %v122_v36 = vand.u32 65535, %v2108_v34  ;;  %v123_v39 = vshrl.u32 %v2108_v34, 16 }
  0x8c   :  { %v85_v25 = vsel %vm84_vm0, %v83_v11, 0  ;;  %v1553_v11 = vld [vmem:[#allocation3 + $0x168] sm:$0xf0]  ;;  %609 = vmatpush.bf16.msra.mxu2 %v1440_v28  ;;  %727 = vmatpush.bf16.msrb.mxu0 %v1544_v42 }
  0x8d   :  { %v87_v29 = vand.u32 31, %v85_v25  ;;  %v2106_v33 = vshrl.u32 %v85_v25, 5  ;;  %v1556_v25 = vor.u32 %v1867_v10, %v1553_v11 }
  0x8f   :  { %v2114_v38 = vsub.s32 32, %v87_v29  ;;  %v90_v46 = vshll.u32 %v2013_v44, %v87_v29  ;;  %v93_v48 = vshll.u32 %v2014_v47, %v87_v29  ;;  %v96_v50 = vshll.u32 %v2015_v49, %v87_v29  ;;  %739 = vmatpush.bf16.msrb.mxu1 %v1556_v25 }
  0x90   :  { %v99_v52 = vshll.u32 %v2016_v51, %v87_v29  ;;  %v102_v60 = vshll.u32 %v2017_v56, %v87_v29  ;;  %vm105_vm1 = vcmp.lt.s32.totalorder %v2106_v33, 1  ;;  %vm107_vm2 = vcmp.lt.s32.totalorder %v2106_v33, 3  ;;  %v1865_v29 = vld [vmem:[#allocation3 + $0x154] sm:$0xf] }
  0x91   :  { %v91_v53 = vshrl.u32 %v2014_v47, %v2114_v38  ;;  %v94_v54 = vshrl.u32 %v2015_v49, %v2114_v38  ;;  %v97_v55 = vshrl.u32 %v2016_v51, %v2114_v38  ;;  %v100_v57 = vshrl.u32 %v2017_v56, %v2114_v38  ;;  %v1537_v51 = vld [vmem:[#allocation3 + $0x148] sm:$0xf0] }
  0x92   :  { %v103_v62 = vshrl.u32 %v2018_v61, %v2114_v38  ;;  %vm108_vm3 = vcmp.lt.s32.totalorder %v2106_v33, 4  ;;  %vm106_vm4 = vcmp.lt.s32.totalorder %v2106_v33, 2  ;;  %v1548_v49 = vor.u32 %v1865_v29, %v1545_v30 }
  0x93   :  { %v2127_v3 = vor.u32 %v91_v53, %v90_v46  ;;  %v2129_v4 = vor.u32 %v94_v54, %v93_v48  ;;  %v2131_v5 = vor.u32 %v97_v55, %v96_v50  ;;  %v101_v6 = vor.u32 %v100_v57, %v99_v52  ;;  %v1864_v46 = vld [vmem:[#allocation3 + $0x144] sm:$0xf0]  ;;  %v1863_v50 = vld [vmem:[#allocation3 + $0x144] sm:$0xf] }
  0x94   :  { %v104_v9 = vor.u32 %v103_v62, %v102_v60  ;;  %v1536_v56 = vor.u32 %v1864_v46, %v1535_v43  ;;  %v1540_v59 = vor.u32 %v1863_v50, %v1537_v51  ;;  %740 = vmatpush.bf16.msrb.mxu1 %v1548_v49  ;;  %v89_v14 = vshrl.u32 %v2013_v44, %v2114_v38 }
  0x95   :  { %v114_v13 = vsel %vm108_vm3, %v101_v6, 920167782  ;;  %v113_v17 = vsel %vm105_vm1, %v2127_v3, %v2129_v4  ;;  %v117_v19 = vsel %vm105_vm1, %v2129_v4, %v2131_v5  ;;  %v110_v11 = vsel %vm108_vm3, %v2131_v5, 2102212464 }
  0x96   :  { %v115_v18 = vsel %vm107_vm2, %v2131_v5, %v114_v13  ;;  %v118_v20 = vsel %vm108_vm3, %v104_v9, 1326507024  ;;  %728 = vmatpush.bf16.msrb.mxu0 %v1536_v56  ;;  %v111_v5 = vsel %vm107_vm2, %v2129_v4, %v110_v11  ;;  %v1529_v56 = vld [vmem:[#allocation3 + $0x138] sm:$0xf0] }
  0x97   :  { %v119_v23 = vsel %vm107_vm2, %v101_v6, %v118_v20  ;;  %v116_v32 = vsel %vm106_vm4, %v113_v17, %v115_v18  ;;  %v109_v20 = vsel %vm105_vm1, %v89_v14, %v2127_v3 }
  0x98   :  { %v120_v35 = vsel %vm106_vm4, %v117_v19, %v119_v23  ;;  %v146_v47 = vand.u32 65535, %v116_v32  ;;  %v147_v48 = vshrl.u32 %v116_v32, 16  ;;  %741 = vmatpush.bf16.msrb.mxu1 %v1540_v59  ;;  %v112_v44 = vsel %vm106_vm4, %v109_v20, %v111_v5 }
  0x99   :  { %v124_v40 = vand.u32 65535, %v120_v35  ;;  %v125_v41 = vshrl.u32 %v120_v35, 16  ;;  %v166_v27 = vmul.u32 %v2108_v34, %v112_v44  ;;  %vm216_vm4 = vweird.f32 %v2072_v37 }
  0x9a   :  { %v149_v54 = vmul.u32 %v147_v48, %v122_v36  ;;  %v150_v55 = vmul.u32 %v146_v47, %v123_v39  ;;  %v148_v61 = vmul.u32 %v146_v47, %v122_v36  ;;  %v151_v2 = vmul.u32 %v147_v48, %v123_v39 }
  0x9b   :  { %v127_v52 = vmul.u32 %v125_v41, %v122_v36  ;;  %v128_v53 = vmul.u32 %v124_v40, %v123_v39  ;;  %v126_v57 = vmul.u32 %v124_v40, %v122_v36  ;;  %v129_v60 = vmul.u32 %v125_v41, %v123_v39 }
  0x9c   :  { %v152_v62 = vshll.u32 %v149_v54, 16  ;;  %v154_v7 = vshll.u32 %v150_v55, 16  ;;  %v153_v18 = vshrl.u32 %v149_v54, 16  ;;  %v155_v23 = vshrl.u32 %v150_v55, 16  ;;  %v1861_v55 = vld [vmem:[#allocation3 + $0x134] sm:$0xf] }
  0x9d   :  { %v130_v58 = vshll.u32 %v127_v52, 16  ;;  %v132_v63 = vshll.u32 %v128_v53, 16  ;;  %v131_v15 = vshrl.u32 %v127_v52, 16  ;;  %v133_v21 = vshrl.u32 %v128_v53, 16  ;;  %v1527_v52 = vld [vmem:[#allocation3 + $0x130] sm:$0xf] }
  0x9e   :  { %vm156_vm6 = vc.u32 %v148_v61, %v152_v62  ;;  %v158_v8 = vadd.s32 %v152_v62, %v148_v61  ;;  %v1862_v53 = vld [vmem:[#allocation3 + $0x134] sm:$0xf0]  ;;  %v1532_v59 = vor.u32 %v1861_v55, %v1529_v56  ;;  %v1859_v61 = vld [vmem:[#allocation3 + $0x124] sm:$0xf]  ;;  %v1521_v62 = vld [vmem:[#allocation3 + $0x128] sm:$0xf0] }
  0x9f   :  { %vm134_vm5 = vc.u32 %v126_v57, %v130_v58  ;;  %v136_v1 = vadd.s32 %v130_v58, %v126_v57  ;;  %v157_v10 = vsel %vm156_vm6, 1, %v2012_v0  ;;  %v1528_v54 = vor.u32 %v1862_v53, %v1527_v52  ;;  %v1519_v57 = vld [vmem:[#allocation3 + $0x120] sm:$0xf] }
  0xa0   :  { %v135_v6 = vsel %vm134_vm5, 1, %v2012_v0  ;;  %v159_v13 = vadd.s32 %v157_v10, %v151_v2  ;;  %vm160_vm8 = vc.u32 %v158_v8, %v154_v7  ;;  %v162_v38 = vadd.s32 %v158_v8, %v154_v7  ;;  %742 = vmatpush.bf16.msrb.mxu1 %v1532_v59  ;;  %v1858_v7 = vld [vmem:[#allocation3 + $0x114] sm:$0xf0]  ;;  %v1857_v8 = vld [vmem:[#allocation3 + $0x114] sm:$0xf] }
  0xa1   :  { %v137_v9 = vadd.s32 %v135_v6, %v129_v60  ;;  %vm138_vm7 = vc.u32 %v136_v1, %v132_v63  ;;  %v161_v17 = vsel %vm160_vm8, 1, %v2012_v0  ;;  %v1860_v60 = vld [vmem:[#allocation3 + $0x124] sm:$0xf0]  ;;  %729 = vmatpush.bf16.msrb.mxu0 %v1528_v54  ;;  %v1524_v2 = vor.u32 %v1859_v61, %v1521_v62  ;;  %v1511_v6 = vld [vmem:[#allocation3 + $0x110] sm:$0xf] }
  0xa2   :  { %v139_v12 = vsel %vm138_vm7, 1, %v2012_v0  ;;  %v163_v19 = vadd.s32 %v161_v17, %v159_v13  ;;  %v1520_v63 = vor.u32 %v1860_v60, %v1519_v57  ;;  %v1512_v14 = vor.u32 %v1858_v7, %v1511_v6  ;;  %v1503_v17 = vld [vmem:[#allocation3 + $0x100] sm:$0xf]  ;;  %v1901_v60 = vld [vmem:[#allocation5 + $0xec] sm:$0xf0] }
  0xa3   :  { %v141_v16 = vadd.s32 %v139_v12, %v137_v9  ;;  %v1513_v9 = vld [vmem:[#allocation3 + $0x118] sm:$0xf0]  ;;  %v753_v56 = vld [vmem:[%s2317_s4] sm:$0x3]  ;;  %v1933_v7 = vld [vmem:[#allocation5 + $0x1ec] sm:$0xf0] }
  0xa4   :  { %v164_v24 = vadd.s32 %v163_v19, %v153_v18  ;;  %743 = vmatpush.bf16.msrb.mxu1 %v1524_v2  ;;  %v1856_v18 = vld [vmem:[#allocation3 + $0x104] sm:$0xf0]  ;;  %v1855_v19 = vld [vmem:[#allocation3 + $0x104] sm:$0xf]  ;;  %v755_v57 = vperm.slane %v753_v56, 0 }
  0xa5   :  { %v142_v22 = vadd.s32 %v141_v16, %v131_v15  ;;  %730 = vmatpush.bf16.msrb.mxu0 %v1520_v63  ;;  %v1516_v16 = vor.u32 %v1857_v8, %v1513_v9  ;;  %v1681_v59 = vld [vmem:[#allocation5 + $0xe0] sm:$0xf]  ;;  %v1899_v8 = vld [vmem:[#allocation5 + $0xe4] sm:$0xf]  ;;  %v1683_v9 = vld [vmem:[#allocation5 + $0xf0] sm:$0xf0] }
  0xa6   :  { %v165_v0 = vadd.s32 %v164_v24, %v155_v23  ;;  %v1809_v61 = vld [vmem:[#allocation5 + $0x1e0] sm:$0xf]  ;;  %v1682_v6 = vor.u32 %v1901_v60, %v1681_v59 }
  0xa7   :  { %v143_v25 = vadd.s32 %v142_v22, %v133_v21  ;;  %v1504_v22 = vor.u32 %v1856_v18, %v1503_v17 }
  0xa8   :  { %v169_v26 = vadd.s32 1, %v165_v0  ;;  %744 = vmatpush.bf16.msrb.mxu1 %v1516_v16  ;;  %1253 = vmatpush.bf16.msrb.mxu2 %v1682_v6 }
  0xa9   :  { %vm168_vm9 = vc.u32 %v143_v25, %v162_v38  ;;  %v167_v33 = vadd.s32 %v162_v38, %v143_v25  ;;  %731 = vmatpush.bf16.msrb.mxu0 %v1512_v14  ;;  %v1508_v25 = vor.u32 %v1855_v19, %v1505_v45  ;;  %v1931_v14 = vld [vmem:[#allocation5 + $0x1e4] sm:$0xf]  ;;  %v1665_v19 = vld [vmem:[#allocation5 + $0xc0] sm:$0xf]  ;;  %v1897_v45 = vld [vmem:[#allocation5 + $0xcc] sm:$0xf0] }
  0xaa   :  { %v170_v28 = vsel %vm168_vm9, %v169_v26, %v165_v0 }
  0xab   :  { %v171_v3 = vadd.s32 %v170_v28, %v166_v27 }
  0xac   :  { %745 = vmatpush.bf16.msrb.mxu1 %v1508_v25  ;;  %v1667_v25 = vld [vmem:[#allocation5 + $0xd0] sm:$0xf0] }
  0xad   :  { %v172_v29 = vadd.s32 536870912, %v171_v3  ;;  %732 = vmatpush.bf16.msrb.mxu0 %v1504_v22  ;;  %v1666_v22 = vor.u32 %v1897_v45, %v1665_v19 }
  0xaf   :  { %v173_v30 = vshrl.u32 %v172_v29, 30  ;;  %1254 = vmatpush.bf16.msrb.mxu2 %v1666_v22 }
  0xb1   :  { %v174_v31 = vshll.u32 %v173_v30, 30  ;;  %v197_v12 = vsub.s32 4, %v173_v30 }
  0xb3   :  { %v175_v4 = vsub.s32 %v171_v3, %v174_v31  ;;  %v198_v21 = vsel %vm75_vm12, %v197_v12, %v173_v30  ;;  %v1810_v12 = vor.u32 %v1933_v7, %v1809_v61 }
  0xb4   :  { %v200_v38 = vsel %vm2180_vm13, 0, %v198_v21 }
  0xb5   :  { %vm176_vm10 = vcmp.lt.s32.totalorder %v175_v4, 0  ;;  %v177_v32 = vsub.s32 0, %v175_v4  ;;  %v217_v28 = vadd.s32 3, %v200_v38  ;;  %1266 = vmatpush.bf16.msrb.mxu3 %v1810_v12  ;;  %v1885_v12 = vld [vmem:[#allocation5 + $0x6c] sm:$0xf0] }
  0xb7   :  { %v178_v35 = vsel %vm176_vm10, %v177_v32, %v175_v4  ;;  %v218_v32 = vand.u32 3, %v217_v28 }
  0xb8   :  { %v179_v36 = vclz %v178_v35 }
  0xb9   :  { %vm219_vm1 = vcmp.lt.s32.totalorder %v218_v32, 2  ;;  %vm220_vm2 = vcmp.eq.s32.totalorder %v218_v32, 0  ;;  %vm223_vm3 = vcmp.eq.s32.totalorder %v218_v32, 2 }
  0xba   :  { %v1368_v39 = vadd.s32 4294967294, %v179_v36 }
  0xbc   :  { %vm1369_vm11 = vcmp.lt.s32.totalorder %v1368_v39, 0 }
  0xbd   :  { %v182_v40 = vsel %vm1369_vm11, 0, %v1368_v39 }
  0xbe   :  { %v183_v41 = vsub.s32 32, %v182_v40  ;;  %v187_v42 = vsub.s32 4294967266, %v182_v40  ;;  %v184_v43 = vshll.u32 %v175_v4, %v182_v40  ;;  %v373_v4 = vand.u32 3, %v200_v38 }
  0xc0   :  { %v185_v46 = vshrl.u32 %v167_v33, %v183_v41  ;;  %v188_v47 = vadd.s32 127, %v187_v42  ;;  %vm374_vm14 = vcmp.lt.s32.totalorder %v373_v4, 2  ;;  %vm375_vm15 = vcmp.eq.s32.totalorder %v373_v4, 0 }
  0xc1   :  { %vm378_vm0 = vcmp.eq.s32.totalorder %v373_v4, 2 }
  0xc2   :  { %v186_v34 = vor.u32 %v185_v46, %v184_v43  ;;  %v189_v48 = vshll.u32 %v188_v47, 23 }
  0xc4   :  { %v190_v49 = vor.u32 4788187, %v189_v48  ;;  %v193_v51 = vcvt.s32.f32 %v186_v34 }
  0xc6   :  { %v191_v50 = vand.u32 2147483647, %v190_v49 }
  0xc8   :  { %v194_v58 = vmul.f32 %v193_v51, %v191_v50  ;;  %v628_v50 = vld [vmem:[%s2315_s2] sm:$0xf] }
  0xca   :  { %v195_v1 = vxor.u32 2147483648, %v194_v58 }
  0xcc   :  { %v196_v11 = vsel %vm75_vm12, %v195_v1, %v194_v58  ;;  %v756_v58 = vperm.slane %v753_v56, 1 }
  0xcd   :  { %v199_v13 = vsel %vm2180_vm13, %v2072_v37, %v196_v11 }
  0xce   :  { %v201_v15 = vmul.f32 %v199_v13, %v199_v13 }
  0xd0   :  { %v202_v20 = vmul.f32 -0.001358992, %v201_v15  ;;  %v209_v5 = vmul.f32 -0.00019511016, %v201_v15 }
  0xd2   :  { %v203_v23 = vadd.f32 0.041655596, %v202_v20  ;;  %v210_v24 = vadd.f32 0.008332121, %v209_v5  ;;  %v1793_v20 = vld [vmem:[#allocation5 + $0x1c0] sm:$0xf] }
  0xd4   :  { %v204_v44 = vmul.f32 %v203_v23, %v201_v15  ;;  %v211_v0 = vmul.f32 %v210_v24, %v201_v15  ;;  %v1929_v23 = vld [vmem:[#allocation5 + $0x1cc] sm:$0xf0]  ;;  %v1895_v24 = vld [vmem:[#allocation5 + $0xc4] sm:$0xf] }
  0xd5   :  { %v1794_v38 = vor.u32 %v1929_v23, %v1793_v20 }
  0xd6   :  { %v205_v26 = vadd.f32 -0.4999988, %v204_v44  ;;  %v212_v27 = vadd.f32 -0.16666654, %v211_v0  ;;  %v1670_v44 = vor.u32 %v1895_v24, %v1667_v25  ;;  %v1927_v0 = vld [vmem:[#allocation5 + $0x1c4] sm:$0xf] }
  0xd7   :  { %1267 = vmatpush.bf16.msrb.mxu3 %v1794_v38  ;;  %v1619_v24 = vld [vmem:[#allocation5 + $0x70] sm:$0xf0]  ;;  %v1915_v25 = vld [vmem:[#allocation5 + $0x164] sm:$0xf] }
  0xd8   :  { %v206_v3 = vmul.f32 %v205_v26, %v201_v15  ;;  %v213_v29 = vmul.f32 %v212_v27, %v201_v15  ;;  %v1811_v15 = vld [vmem:[#allocation5 + $0x1f0] sm:$0xf0] }
  0xd9   :  { %v1814_v18 = vor.u32 %v1931_v14, %v1811_v15  ;;  %v1795_v26 = vld [vmem:[#allocation5 + $0x1d0] sm:$0xf0] }
  0xda   :  { %v207_v31 = vadd.f32 1.0, %v206_v3  ;;  %v214_v30 = vadd.f32 1.0, %v213_v29  ;;  %v1798_v3 = vor.u32 %v1927_v0, %v1795_v26  ;;  %v1649_v29 = vld [vmem:[#allocation5 + $0xa0] sm:$0xf] }
  0xdc   :  { %v215_v35 = vmul.f32 %v214_v30, %v199_v13  ;;  %v224_v36 = vxor.u32 2147483648, %v207_v31  ;;  %v1686_v13 = vor.u32 %v1899_v8, %v1683_v9  ;;  %v1777_v30 = vld [vmem:[#allocation5 + $0x1a0] sm:$0xf] }
  0xde   :  { %v221_v39 = vxor.u32 2147483648, %v215_v35  ;;  %v380_v33 = vsel %vm378_vm0, %v224_v36, %v215_v35  ;;  %v225_v42 = vsel %vm223_vm3, %v224_v36, %v215_v35  ;;  %v1925_v36 = vld [vmem:[#allocation5 + $0x1ac] sm:$0xf0] }
  0xe0   :  { %v377_v40 = vsel %vm375_vm15, %v207_v31, %v221_v39  ;;  %v222_v41 = vsel %vm220_vm2, %v207_v31, %v221_v39  ;;  %v1893_v31 = vld [vmem:[#allocation5 + $0xac] sm:$0xf0]  ;;  %v1891_v39 = vld [vmem:[#allocation5 + $0xa4] sm:$0xf] }
  0xe1   :  { %v381_v43 = vsel %vm374_vm14, %v377_v40, %v380_v33  ;;  %v226_v46 = vsel %vm219_vm1, %v222_v41, %v225_v42  ;;  %v1650_v35 = vor.u32 %v1893_v31, %v1649_v29  ;;  %v1651_v40 = vld [vmem:[#allocation5 + $0xb0] sm:$0xf0]  ;;  %v1778_v42 = vor.u32 %v1925_v36, %v1777_v30  ;;  %v1601_v29 = vld [vmem:[#allocation5 + $0x40] sm:$0xf]  ;;  %v1881_v31 = vld [vmem:[#allocation5 + $0x4c] sm:$0xf0] }
  0xe2   :  { %v382_v47 = vsel %vm216_vm4, nan, %v381_v43  ;;  %v227_v34 = vsel %vm216_vm4, nan, %v226_v46  ;;  %v1654_v43 = vor.u32 %v1891_v39, %v1651_v40  ;;  %v1923_v46 = vld [vmem:[#allocation5 + $0x1a4] sm:$0xf]  ;;  %v1913_v36 = vld [vmem:[#allocation5 + $0x14c] sm:$0xf0] }
  0xe3   :  { %v383_v48 = vpack.c.bf16 %v382_v47, %v382_v47  ;;  %v228_v49 = vpack.c.bf16 %v227_v34, %v227_v34  ;;  %v1779_v47 = vld [vmem:[#allocation5 + $0x1b0] sm:$0xf0]  ;;  %1255 = vmatpush.bf16.msrb.mxu2 %v1650_v35  ;;  %1268 = vmatpush.bf16.msrb.mxu3 %v1778_v42  ;;  %v1729_v35 = vld [vmem:[#allocation5 + $0x140] sm:$0xf]  ;;  %v1879_v39 = vld [vmem:[#allocation5 + $0x44] sm:$0xf] }
  0xe4   :  { %v1730_v42 = vor.u32 %v1913_v36, %v1729_v35  ;;  %v1900_v35 = vld [vmem:[#allocation5 + $0xec] sm:$0xf]  ;;  %v1691_v36 = vld [vmem:[#allocation5 + $0xf8] sm:$0xf0] }
  0xe5   :  { %504 = vmatmul.bf16.vlgmr.msra.gmra.mxu0 %v383_v48  ;;  %517 = vmatmul.bf16.vlgmr.msra.gmra.mxu1 %v383_v48 }
  0xe6   :  { %610 = vmatmul.bf16.vlgmr.msra.gmra.mxu2 %v228_v49  ;;  %623 = vmatmul.bf16.vlgmr.msra.gmra.mxu3 %v228_v49  ;;  %v1782_v49 = vor.u32 %v1923_v46, %v1779_v47  ;;  %v1603_v46 = vld [vmem:[#allocation5 + $0x50] sm:$0xf0]  ;;  %v1911_v47 = vld [vmem:[#allocation5 + $0x144] sm:$0xf] }
  0xe7   :  { %1279 = vmatpush.bf16.msra.mxu0 %v1686_v13  ;;  %1292 = vmatpush.bf16.msra.mxu1 %v1814_v18  ;;  %v1883_v18 = vld [vmem:[#allocation5 + $0x64] sm:$0xf] }
  0xe8   :  { %v1622_v26 = vor.u32 %v1883_v18, %v1619_v24  ;;  %v1571_v24 = vld [vmem:[#allocation5 + $0x10] sm:$0xf0] }
  0xeb   :  { %1280 = vmatpush.bf16.msra.mxu0 %v1670_v44  ;;  %1293 = vmatpush.bf16.msra.mxu1 %v1798_v3  ;;  %v1747_v3 = vld [vmem:[#allocation5 + $0x170] sm:$0xf0] }
  0xef   :  { %1281 = vmatpush.bf16.msra.mxu0 %v1654_v43  ;;  %1294 = vmatpush.bf16.msra.mxu1 %v1782_v49 }
  0xf5   :  { %733 = vmatmul.bf16.vlgmr.msrb.gmra.mxu0 %v628_v50  ;;  %746 = vmatmul.bf16.vlgmr.msrb.gmra.mxu1 %v628_v50  ;;  %v1633_v50 = vld [vmem:[#allocation5 + $0x80] sm:$0xf] }
 0x162   :  { %v505_v51 = vpop.f32.mrf.mxu0  ;;  %v518_v52 = vpop.f32.mrf.mxu1 }
 0x169   :  { %v611_v53 = vpop.f32.mrf.mxu2  ;;  %v624_v37 = vpop.f32.mrf.mxu3 }
 0x16a   :  { %v507_v54 = vpop.f32.mrf.mxu0  ;;  %v520_v55 = vpop.f32.mrf.mxu1  ;;  %v612_v62 = vadd.f32 %v611_v53, %v505_v51  ;;  %v625_v63 = vadd.f32 %v624_v37, %v518_v52  ;;  %v1889_v51 = vld [vmem:[#allocation5 + $0x8c] sm:$0xf0]  ;;  %v1761_v52 = vld [vmem:[#allocation5 + $0x180] sm:$0xf] }
 0x16b   :  { %v1634_v55 = vor.u32 %v1889_v51, %v1633_v50 }
 0x16d   :  { %1256 = vmatpush.bf16.msrb.mxu2 %v1634_v55 }
 0x171   :  { %v613_v1 = vpop.f32.mrf.mxu2  ;;  %v626_v2 = vpop.f32.mrf.mxu3 }
 0x172   :  { %v734_v10 = vpop.f32.mrf.mxu0  ;;  %v747_v11 = vpop.f32.mrf.mxu1  ;;  %v1635_v1 = vld [vmem:[#allocation5 + $0x90] sm:$0xf0]  ;;  %v1919_v2 = vld [vmem:[#allocation5 + $0x184] sm:$0xf] }
 0x173   :  { %v751_v16 = vadd.f32 %v734_v10, %v612_v62  ;;  %v752_v17 = vadd.f32 %v747_v11, %v625_v63  ;;  %v1763_v10 = vld [vmem:[#allocation5 + $0x190] sm:$0xf0]  ;;  %v1617_v11 = vld [vmem:[#allocation5 + $0x60] sm:$0xf] }
 0x174   :  { %v1766_v14 = vor.u32 %v1919_v2, %v1763_v10  ;;  %v1618_v15 = vor.u32 %v1885_v12, %v1617_v11  ;;  %v1715_v10 = vld [vmem:[#allocation5 + $0x130] sm:$0xf0]  ;;  %v1569_v11 = vld [vmem:[#allocation5] sm:$0xf]  ;;  %v1873_v12 = vld [vmem:[#allocation5 + $0xc] sm:$0xf0] }
 0x175   :  { %v2200_v5 = vadd.f32 %v755_v57, %v751_v16  ;;  %v2202_v21 = vadd.f32 %v756_v58, %v752_v17  ;;  %v1921_v57 = vld [vmem:[#allocation5 + $0x18c] sm:$0xf0]  ;;  %v1887_v58 = vld [vmem:[#allocation5 + $0x84] sm:$0xf]  ;;  %v1745_v16 = vld [vmem:[#allocation5 + $0x160] sm:$0xf] }
 0x176   :  { %v1762_v62 = vor.u32 %v1921_v57, %v1761_v52  ;;  %v1638_v9 = vor.u32 %v1887_v58, %v1635_v1  ;;  %v1917_v17 = vld [vmem:[#allocation5 + $0x16c] sm:$0xf0]  ;;  %1295 = vmatpush.bf16.msra.mxu1 %v1766_v14  ;;  %1257 = vmatpush.bf16.msrb.mxu2 %v1618_v15  ;;  %v1606_v52 = vor.u32 %v1879_v39, %v1603_v46  ;;  %v1713_v58 = vld [vmem:[#allocation5 + $0x120] sm:$0xf]  ;;  %v1673_v46 = vld [vmem:[#allocation5 + $0xc8] sm:$0xf] }
 0x177   :  { %v2205_v27 = vmul.f32 0.70710677, %v2200_v5  ;;  %v2208_v28 = vmul.f32 0.70710677, %v2202_v21  ;;  %v1746_v22 = vor.u32 %v1917_v17, %v1745_v16  ;;  %v1570_v15 = vor.u32 %v1873_v12, %v1569_v11  ;;  %v1697_v16 = vld [vmem:[#allocation5 + $0x100] sm:$0xf] }
 0x178   :  { %1269 = vmatpush.bf16.msrb.mxu3 %v1762_v62  ;;  %1282 = vmatpush.bf16.msra.mxu0 %v1638_v9  ;;  %v1905_v17 = vld [vmem:[#allocation5 + $0x10c] sm:$0xf0]  ;;  %v1926_v11 = vld [vmem:[#allocation5 + $0x1b4] sm:$0xf0]  ;;  %v1892_v12 = vld [vmem:[#allocation5 + $0xac] sm:$0xf] }
 0x179   :  { %v765_v4 = vmul.f32 %v2205_v27, %v2205_v27  ;;  %v805_v32 = vmul.f32 %v2208_v28, %v2208_v28 }
 0x17a   :  { %v736_v33 = vpop.f32.mrf.mxu0  ;;  %v749_v41 = vpop.f32.mrf.mxu1 }
 0x17b   :  { %v2214_v34 = vmin.f32 %v765_v4, 16.0  ;;  %v2216_v48 = vmin.f32 %v805_v32, 16.0  ;;  %v1750_v4 = vor.u32 %v1915_v25, %v1747_v3  ;;  %v1602_v32 = vor.u32 %v1881_v31, %v1601_v29  ;;  %v1903_v25 = vld [vmem:[#allocation5 + $0x104] sm:$0xf]  ;;  %v1934_v29 = vld [vmem:[#allocation5 + $0x1f4] sm:$0xf0] }
 0x17c   :  { %1270 = vmatpush.bf16.msrb.mxu3 %v1746_v22  ;;  %1283 = vmatpush.bf16.msra.mxu0 %v1622_v26 }
 0x17d   :  { %v767_v53 = vmul.f32 2.1237322e-06, %v2214_v34  ;;  %v778_v37 = vmul.f32 3.8918573e-05, %v2214_v34  ;;  %v807_v54 = vmul.f32 2.1237322e-06, %v2216_v48  ;;  %1296 = vmatpush.bf16.msra.mxu1 %v1750_v4  ;;  %1258 = vmatpush.bf16.msrb.mxu2 %v1602_v32 }
 0x17e   :  { %v818_v56 = vmul.f32 3.8918573e-05, %v2216_v48 }
 0x17f   :  { %v768_v59 = vadd.f32 0.00028619796, %v767_v53  ;;  %v779_v60 = vadd.f32 0.001143296, %v778_v37  ;;  %v808_v61 = vadd.f32 0.00028619796, %v807_v54 }
 0x180   :  { %v819_v63 = vadd.f32 0.001143296, %v818_v56  ;;  %1271 = vmatpush.bf16.msrb.mxu3 %v1730_v42  ;;  %v1731_v53 = vld [vmem:[#allocation5 + $0x150] sm:$0xf0]  ;;  %v1585_v37 = vld [vmem:[#allocation5 + $0x20] sm:$0xf]  ;;  %1284 = vmatpush.bf16.msra.mxu0 %v1606_v52 }
 0x181   :  { %v769_v6 = vmul.f32 %v768_v59, %v2214_v34  ;;  %v780_v7 = vmul.f32 %v779_v60, %v2214_v34  ;;  %v809_v8 = vmul.f32 %v808_v61, %v2216_v48  ;;  %v1877_v54 = vld [vmem:[#allocation5 + $0x2c] sm:$0xf0]  ;;  %v1734_v56 = vor.u32 %v1911_v47, %v1731_v53  ;;  %v1875_v60 = vld [vmem:[#allocation5 + $0x24] sm:$0xf]  ;;  %v1819_v42 = vld [vmem:[#allocation5 + $0x1f8] sm:$0xf0] }
 0x182   :  { %v820_v13 = vmul.f32 %v819_v63, %v2216_v48  ;;  %v1586_v57 = vor.u32 %v1877_v54, %v1585_v37  ;;  %v1909_v59 = vld [vmem:[#allocation5 + $0x12c] sm:$0xf0]  ;;  %v1898_v47 = vld [vmem:[#allocation5 + $0xd4] sm:$0xf0]  ;;  %v1896_v53 = vld [vmem:[#allocation5 + $0xcc] sm:$0xf] }
 0x183   :  { %v770_v19 = vadd.f32 0.0036580483, %v769_v6  ;;  %v781_v45 = vadd.f32 0.014752088, %v780_v7  ;;  %v810_v20 = vadd.f32 0.0036580483, %v809_v8  ;;  %v1714_v1 = vor.u32 %v1909_v59, %v1713_v58  ;;  %1297 = vmatpush.bf16.msra.mxu1 %v1734_v56 }
 0x184   :  { %v821_v23 = vadd.f32 0.014752088, %v820_v13  ;;  %1259 = vmatpush.bf16.msrb.mxu2 %v1586_v57  ;;  %v1587_v6 = vld [vmem:[#allocation5 + $0x30] sm:$0xf0]  ;;  %v1907_v7 = vld [vmem:[#allocation5 + $0x124] sm:$0xf] }
 0x185   :  { %v771_v38 = vmul.f32 %v770_v19, %v2214_v34  ;;  %v782_v44 = vmul.f32 %v781_v45, %v2214_v34  ;;  %v811_v0 = vmul.f32 %v810_v20, %v2216_v48  ;;  %1272 = vmatpush.bf16.msrb.mxu3 %v1714_v1  ;;  %v1590_v9 = vor.u32 %v1875_v60, %v1587_v6  ;;  %v1930_v52 = vld [vmem:[#allocation5 + $0x1d4] sm:$0xf0]  ;;  %v1675_v37 = vld [vmem:[#allocation5 + $0xd8] sm:$0xf0]  ;;  %v1928_v59 = vld [vmem:[#allocation5 + $0x1cc] sm:$0xf] }
 0x186   :  { %v822_v30 = vmul.f32 %v821_v23, %v2216_v48  ;;  %v1718_v14 = vor.u32 %v1907_v7, %v1715_v10  ;;  %v1698_v20 = vor.u32 %v1905_v17, %v1697_v16  ;;  %v1871_v23 = vld [vmem:[#allocation5 + $0x4] sm:$0xf]  ;;  %v1678_v58 = vor.u32 %v1896_v53, %v1675_v37  ;;  %v1803_v60 = vld [vmem:[#allocation5 + $0x1d8] sm:$0xf0]  ;;  %v1785_v6 = vld [vmem:[#allocation5 + $0x1a8] sm:$0xf] }
 0x187   :  { %v772_v40 = vadd.f32 0.05243302, %v771_v38  ;;  %v783_v33 = vadd.f32 0.112945676, %v782_v44  ;;  %v812_v41 = vadd.f32 0.05243302, %v811_v0  ;;  %1285 = vmatpush.bf16.msra.mxu0 %v1590_v9  ;;  %v1574_v3 = vor.u32 %v1871_v23, %v1571_v24 }
 0x188   :  { %v823_v43 = vadd.f32 0.112945676, %v822_v30  ;;  %1298 = vmatpush.bf16.msra.mxu1 %v1718_v14  ;;  %1260 = vmatpush.bf16.msrb.mxu2 %v1570_v15  ;;  %v1699_v38 = vld [vmem:[#allocation5 + $0x110] sm:$0xf0]  ;;  %v1689_v44 = vld [vmem:[#allocation5 + $0xe8] sm:$0xf]  ;;  %v1806_v1 = vor.u32 %v1928_v59, %v1803_v60  ;;  %v1786_v16 = vor.u32 %v1926_v11, %v1785_v6 }
 0x189   :  { %v773_v49 = vmul.f32 %v772_v40, %v2214_v34  ;;  %v784_v50 = vmul.f32 %v783_v33, %v2214_v34  ;;  %v813_v51 = vmul.f32 %v812_v41, %v2216_v48  ;;  %1273 = vmatpush.bf16.msrb.mxu3 %v1698_v20  ;;  %v1817_v0 = vld [vmem:[#allocation5 + $0x1e8] sm:$0xf]  ;;  %v1702_v30 = vor.u32 %v1903_v25, %v1699_v38  ;;  %v1932_v41 = vld [vmem:[#allocation5 + $0x1ec] sm:$0xf]  ;;  %v1659_v17 = vld [vmem:[#allocation5 + $0xb8] sm:$0xf0] }
 0x18a   :  { %v824_v55 = vmul.f32 %v823_v43, %v2216_v48  ;;  %v1818_v32 = vor.u32 %v1934_v29, %v1817_v0  ;;  %v1694_v33 = vor.u32 %v1900_v35, %v1691_v36  ;;  %v1822_v43 = vor.u32 %v1932_v41, %v1819_v42  ;;  %v1787_v20 = vld [vmem:[#allocation5 + $0x1b8] sm:$0xf0]  ;;  %v1890_v23 = vld [vmem:[#allocation5 + $0x94] sm:$0xf0]  ;;  %v1769_v38 = vld [vmem:[#allocation5 + $0x188] sm:$0xf] }
 0x18b   :  { %v774_v61 = vadd.f32 0.18741608, %v773_v49  ;;  %v785_v62 = vadd.f32 0.4994258, %v784_v50  ;;  %v814_v63 = vadd.f32 0.18741608, %v813_v51  ;;  %1286 = vmatpush.bf16.msra.mxu0 %v1574_v3  ;;  %v1674_v51 = vor.u32 %v1898_v47, %v1673_v46 }
 0x18c   :  { %v825_v2 = vadd.f32 0.4994258, %v824_v55  ;;  %1299 = vmatpush.bf16.msra.mxu1 %v1702_v30  ;;  %v1801_v49 = vld [vmem:[#allocation5 + $0x1c8] sm:$0xf]  ;;  %v1643_v29 = vld [vmem:[#allocation5 + $0x98] sm:$0xf0] }
 0x18d   :  { %v786_v8 = vmul.f32 %v785_v62, %v2214_v34  ;;  %v775_v18 = vmul.f32 %v774_v61, %v2214_v34  ;;  %v815_v45 = vmul.f32 %v814_v63, %v2216_v48  ;;  %v1902_v34 = vld [vmem:[#allocation5 + $0xf4] sm:$0xf0]  ;;  %1318 = vmatpush.bf16.msra.mxu3 %v1818_v32  ;;  %v1802_v57 = vor.u32 %v1930_v52, %v1801_v49  ;;  %v1657_v61 = vld [vmem:[#allocation5 + $0xa8] sm:$0xf]  ;;  %v1771_v30 = vld [vmem:[#allocation5 + $0x198] sm:$0xf0] }
 0x18e   :  { %v826_v13 = vmul.f32 %v825_v2, %v2216_v48  ;;  %v1690_v4 = vor.u32 %v1902_v34, %v1689_v44  ;;  %v1894_v2 = vld [vmem:[#allocation5 + $0xb4] sm:$0xf0]  ;;  %v1888_v34 = vld [vmem:[#allocation5 + $0x8c] sm:$0xf]  ;;  %v1625_v36 = vld [vmem:[#allocation5 + $0x68] sm:$0xf] }
 0x18f   :  { %v2237_v19 = vadd.f32 1.0, %v786_v8  ;;  %v2244_v26 = vadd.f32 1.1283791, %v775_v18  ;;  %v2246_v48 = vadd.f32 1.1283791, %v815_v45  ;;  %1331 = vmatpush.bf16.msrb.mxu0 %v1694_v33  ;;  %v1658_v10 = vor.u32 %v1894_v2, %v1657_v61 }
 0x190   :  { %v2240_v22 = vadd.f32 1.0, %v826_v13  ;;  %1305 = vmatpush.bf16.msra.mxu2 %v1690_v4  ;;  %1344 = vmatpush.bf16.msrb.mxu1 %v1822_v43  ;;  %v1924_v18 = vld [vmem:[#allocation5 + $0x1ac] sm:$0xf]  ;;  %v1662_v45 = vor.u32 %v1892_v12, %v1659_v17  ;;  %v1922_v44 = vld [vmem:[#allocation5 + $0x194] sm:$0xf0]  ;;  %v1646_v35 = vor.u32 %v1888_v34, %v1643_v29  ;;  %v761_v6 = vmul.f32 0.5, %v2200_v5 }
 0x191   :  { %1950 = vrcp.f32 %v2237_v19  ;;  %v797_v31 = vand.u32 2147483647, %v2237_v19  ;;  %v799_v39 = vand.u32 2147483648, %v2237_v19  ;;  %vm793_vm5 = vweird.f32 %v2237_v19  ;;  %1319 = vmatpush.bf16.msra.mxu3 %v1802_v57  ;;  %v1918_v43 = vld [vmem:[#allocation5 + $0x174] sm:$0xf0] }
 0x192   :  { %1952 = vrcp.f32 %v2240_v22  ;;  %v839_v40 = vand.u32 2147483648, %v2240_v22  ;;  %v837_v63 = vand.u32 2147483647, %v2240_v22  ;;  %vm833_vm10 = vweird.f32 %v2240_v22  ;;  %v1884_v46 = vld [vmem:[#allocation5 + $0x6c] sm:$0xf] }
 0x193   :  { %vm2259_vm7 = vcmp.eq.f32.partialorder %v797_v31, 8.507059e+37  ;;  %v800_v9 = vor.u32 1.1754944e-38, %v799_v39  ;;  %1332 = vmatpush.bf16.msrb.mxu0 %v1678_v58  ;;  %v1790_v25 = vor.u32 %v1924_v18, %v1787_v20  ;;  %v1920_v31 = vld [vmem:[#allocation5 + $0x18c] sm:$0xf]  ;;  %v1770_v32 = vor.u32 %v1922_v44, %v1769_v38  ;;  %v1886_v39 = vld [vmem:[#allocation5 + $0x74] sm:$0xf0] }
 0x194   :  { %1306 = vmatpush.bf16.msra.mxu2 %v1674_v51  ;;  %v840_v15 = vor.u32 1.1754944e-38, %v839_v40  ;;  %1345 = vmatpush.bf16.msrb.mxu1 %v1806_v1  ;;  %v1753_v40 = vld [vmem:[#allocation5 + $0x168] sm:$0xf]  ;;  %v777_v33 = vmul.f32 %v2244_v26, %v2205_v27  ;;  %v1774_v42 = vor.u32 %v1920_v31, %v1771_v30  ;;  %v1627_v47 = vld [vmem:[#allocation5 + $0x78] sm:$0xf0]  ;;  %v817_v51 = vmul.f32 %v2246_v48, %v2208_v28 }
 0x195   :  { %1320 = vmatpush.bf16.msra.mxu3 %v1786_v16  ;;  %vm838_vm12 = vcmp.eq.f32.partialorder %v837_v63, 8.507059e+37  ;;  %v1916_v27 = vld [vmem:[#allocation5 + $0x16c] sm:$0xf]  ;;  %v1755_v26 = vld [vmem:[#allocation5 + $0x178] sm:$0xf0]  ;;  %v1626_v37 = vor.u32 %v1886_v39, %v1625_v36  ;;  %v1754_v56 = vor.u32 %v1918_v43, %v1753_v40  ;;  %v1630_v58 = vor.u32 %v1884_v46, %v1627_v47 }
 0x196   :  { %v1882_v59 = vld [vmem:[#allocation5 + $0x54] sm:$0xf0]  ;;  %v1737_v60 = vld [vmem:[#allocation5 + $0x148] sm:$0xf]  ;;  %v1758_v61 = vor.u32 %v1916_v27, %v1755_v26  ;;  %v1912_v1 = vld [vmem:[#allocation5 + $0x14c] sm:$0xf] }
 0x197   :  { %v2251_v50 = vpop.eup %1950  ;;  %1333 = vmatpush.bf16.msrb.mxu0 %v1662_v45  ;;  %v1914_v28 = vld [vmem:[#allocation5 + $0x154] sm:$0xf0]  ;;  %v1739_v2 = vld [vmem:[#allocation5 + $0x158] sm:$0xf0]  ;;  %v1908_v20 = vld [vmem:[#allocation5 + $0x12c] sm:$0xf] }
 0x198   :  { %v2254_v54 = vpop.eup %1952  ;;  %v789_v55 = vmul.f32 %v2251_v50, %v2237_v19  ;;  %vm794_vm6 = vweird.f32 %v2251_v50  ;;  %1307 = vmatpush.bf16.msra.mxu2 %v1658_v10  ;;  %1346 = vmatpush.bf16.msrb.mxu1 %v1790_v25  ;;  %v762_v10 = vmul.f32 0.5, %v2202_v21  ;;  %v1738_v12 = vor.u32 %v1914_v28, %v1737_v60  ;;  %v1878_v14 = vld [vmem:[#allocation5 + $0x34] sm:$0xf0]  ;;  %v1595_v45 = vld [vmem:[#allocation5 + $0x38] sm:$0xf0] }
 0x199   :  { %v829_v62 = vmul.f32 %v2254_v54, %v2240_v22  ;;  %vm834_vm8 = vweird.f32 %v2254_v54  ;;  %vm2271_vm9 = vmor %vm793_vm5, %vm794_vm6  ;;  %v1641_v22 = vld [vmem:[#allocation5 + $0x88] sm:$0xf]  ;;  %1321 = vmatpush.bf16.msra.mxu3 %v1770_v32  ;;  %v1742_v17 = vor.u32 %v1912_v1, %v1739_v2  ;;  %v1910_v18 = vld [vmem:[#allocation5 + $0x134] sm:$0xf0] }
 0x19a   :  { %v790_v7 = vsub.f32 1.0, %v789_v55  ;;  %vm2276_vm11 = vmor %vm833_vm10, %vm834_vm8  ;;  %v1642_v3 = vor.u32 %v1890_v23, %v1641_v22  ;;  %v1609_v55 = vld [vmem:[#allocation5 + $0x48] sm:$0xf]  ;;  %v1723_v22 = vld [vmem:[#allocation5 + $0x138] sm:$0xf0] }
 0x19b   :  { %v830_v13 = vsub.f32 1.0, %v829_v62  ;;  %1334 = vmatpush.bf16.msrb.mxu0 %v1646_v35  ;;  %v1611_v62 = vld [vmem:[#allocation5 + $0x58] sm:$0xf0]  ;;  %v1610_v8 = vor.u32 %v1882_v59, %v1609_v55  ;;  %v1577_v38 = vld [vmem:[#allocation5 + $0x8] sm:$0xf]  ;;  %v1726_v34 = vor.u32 %v1908_v20, %v1723_v22 }
 0x19c   :  { %v791_v19 = vmul.f32 %v2251_v50, %v790_v7  ;;  %1308 = vmatpush.bf16.msra.mxu2 %v1642_v3  ;;  %1347 = vmatpush.bf16.msrb.mxu1 %v1774_v42  ;;  %v1874_v44 = vld [vmem:[#allocation5 + $0x14] sm:$0xf0]  ;;  %v1872_v29 = vld [vmem:[#allocation5 + $0xc] sm:$0xf]  ;;  %v1707_v35 = vld [vmem:[#allocation5 + $0x118] sm:$0xf0] }
 0x19d   :  { %v831_v24 = vmul.f32 %v2254_v54, %v830_v13  ;;  %1322 = vmatpush.bf16.msra.mxu3 %v1754_v56  ;;  %v1906_v3 = vld [vmem:[#allocation5 + $0x114] sm:$0xf0]  ;;  %v1904_v32 = vld [vmem:[#allocation5 + $0x10c] sm:$0xf]  ;;  %v1578_v36 = vor.u32 %v1874_v44, %v1577_v38  ;;  %v916_v43 = vld [vmem:[%s2319_s6] sm:$0xf] }
 0x19e   :  { %v792_v0 = vadd.f32 %v2251_v50, %v791_v19  ;;  %v1876_v19 = vld [vmem:[#allocation5 + $0x2c] sm:$0xf]  ;;  %v1710_v42 = vor.u32 %v1904_v32, %v1707_v35  ;;  %v919_v46 = vperm.slane %v916_v43, 1  ;;  %v921_v59 = vperm.slane %v916_v43, 3 }
 0x19f   :  { %v832_v4 = vadd.f32 %v2254_v54, %v831_v24  ;;  %1335 = vmatpush.bf16.msrb.mxu0 %v1630_v58  ;;  %v1598_v25 = vor.u32 %v1876_v19, %v1595_v45 }
 0x1a0   :  { %v796_v41 = vsel %vm2271_vm9, %v2251_v50, %v792_v0  ;;  %1309 = vmatpush.bf16.msra.mxu2 %v1626_v37  ;;  %1348 = vmatpush.bf16.msrb.mxu1 %v1758_v61  ;;  %v1705_v0 = vld [vmem:[#allocation5 + $0x108] sm:$0xf]  ;;  %v920_v61 = vperm.slane %v916_v43, 2 }
 0x1a1   :  { %v801_v49 = vsel %vm2259_vm7, %v800_v9, %v796_v41  ;;  %v836_v52 = vsel %vm2276_vm11, %v2254_v54, %v832_v4  ;;  %v1880_v54 = vld [vmem:[#allocation5 + $0x4c] sm:$0xf]  ;;  %v1593_v9 = vld [vmem:[#allocation5 + $0x28] sm:$0xf]  ;;  %1323 = vmatpush.bf16.msra.mxu3 %v1738_v12  ;;  %v1579_v4 = vld [vmem:[#allocation5 + $0x18] sm:$0xf0] }
 0x1a2   :  { %v802_v53 = vmul.f32 %v801_v49, %v777_v33  ;;  %v841_v50 = vsel %vm838_vm12, %v840_v15, %v836_v52  ;;  %v1614_v13 = vor.u32 %v1880_v54, %v1611_v62  ;;  %v1721_v15 = vld [vmem:[#allocation5 + $0x128] sm:$0xf]  ;;  %v1594_v23 = vor.u32 %v1878_v14, %v1593_v9 }
 0x1a3   :  { %v842_v57 = vmul.f32 %v841_v50, %v817_v51  ;;  %v1722_v21 = vor.u32 %v1910_v18, %v1721_v15  ;;  %v1706_v33 = vor.u32 %v1906_v3, %v1705_v0  ;;  %v1582_v41 = vor.u32 %v1872_v29, %v1579_v4 }
 0x1a4   :  { %v1565_v48 = vclamps-f32 %v802_v53, 1.0  ;;  %1310 = vmatpush.bf16.msra.mxu2 %v1610_v8  ;;  %1336 = vmatpush.bf16.msrb.mxu0 %v1614_v13  ;;  %v918_v52 = vperm.slane %v916_v43, 0 }
 0x1a5   :  { %v1566_v63 = vclamps-f32 %v842_v57, 1.0  ;;  %1349 = vmatpush.bf16.msrb.mxu1 %v1742_v17  ;;  %1324 = vmatpush.bf16.msra.mxu3 %v1722_v21 }
 0x1a6   :  { %v845_v7 = vadd.f32 1.0, %v1565_v48 }
 0x1a7   :  { %v846_v11 = vadd.f32 1.0, %v1566_v63 }
 0x1a8   :  { %v847_v16 = vmul.f32 %v845_v7, %v761_v6  ;;  %1311 = vmatpush.bf16.msra.mxu2 %v1594_v23  ;;  %1337 = vmatpush.bf16.msrb.mxu0 %v1598_v25 }
 0x1a9   :  { %v848_v5 = vmul.f32 %v846_v11, %v762_v10  ;;  %1350 = vmatpush.bf16.msrb.mxu1 %v1726_v34  ;;  %1325 = vmatpush.bf16.msra.mxu3 %v1706_v33 }
 0x1ab   :  { %v849_v24 = vpack.c.bf16 %v848_v5, %v847_v16 }
 0x1ac   :  { %1312 = vmatpush.bf16.msra.mxu2 %v1578_v36  ;;  %1338 = vmatpush.bf16.msrb.mxu0 %v1582_v41 }
 0x1ad   :  { %v927_v31 = vunpack.c.l.b16 %v849_v24  ;;  %v928_v30 = vunpack.c.h.b16 %v849_v24  ;;  %1351 = vmatpush.bf16.msrb.mxu1 %v1710_v42 }
 0x1af   :  { %v929_v39 = vpack.c.b16 %v927_v31, %v927_v31  ;;  %v930_v40 = vpack.c.b16 %v928_v30, %v928_v30 }
 0x1b1   :  { %1261 = vmatmul.bf16.vlgmr.msrb.gmra.mxu2 %v929_v39  ;;  %1274 = vmatmul.bf16.vlgmr.msrb.gmra.mxu3 %v930_v40 }
 0x1b2   :  { %1287 = vmatmul.bf16.vlgmr.msra.gmra.mxu0 %v929_v39  ;;  %1300 = vmatmul.bf16.vlgmr.msra.gmra.mxu1 %v930_v40 }
 0x1c1   :  { %1313 = vmatmul.bf16.vlgmr.msra.gmra.mxu2 %v929_v39  ;;  %1326 = vmatmul.bf16.vlgmr.msra.gmra.mxu3 %v930_v40 }
 0x1c2   :  { %1339 = vmatmul.bf16.vlgmr.msrb.gmra.mxu0 %v929_v39  ;;  %1352 = vmatmul.bf16.vlgmr.msrb.gmra.mxu1 %v930_v40 }
 0x22f   :  { %v1288_v47 = vpop.f32.mrf.mxu0  ;;  %v1301_v49 = vpop.f32.mrf.mxu1 }
 0x230   :  { %v1289_v51 = vadd.f32 %v1288_v47, %v919_v46 }
 0x232   :  { %v1302_v27 = vadd.f32 %v1301_v49, %v1289_v51 }
 0x234   :  { %1358 = vst [vmem:[%s2320_s7 + $0x8] sm:$0xff] %v1302_v27  ;;  %v1262_v26 = vpop.f32.mrf.mxu2  ;;  %v1275_v53 = vpop.f32.mrf.mxu3 }
 0x235   :  { %v1263_v50 = vadd.f32 %v1262_v26, %v918_v52 }
 0x237   :  { %v1276_v37 = vadd.f32 %v1275_v53, %v1263_v50  ;;  %v1290_v55 = vpop.f32.mrf.mxu0  ;;  %v1303_v57 = vpop.f32.mrf.mxu1 }
 0x239   :  { %1357 = vst [vmem:[%s2320_s7] sm:$0xff] %v1276_v37 }
 0x23c   :  { %v1264_v56 = vpop.f32.mrf.mxu2  ;;  %v1277_v58 = vpop.f32.mrf.mxu3 }
 0x23f   :  { %v1340_v60 = vpop.f32.mrf.mxu0  ;;  %v1353_v28 = vpop.f32.mrf.mxu1 }
 0x240   :  { %v1341_v48 = vadd.f32 %v1340_v60, %v921_v59 }
 0x242   :  { %v1354_v54 = vadd.f32 %v1353_v28, %v1341_v48 }
 0x244   :  { %1360 = vst [vmem:[%s2320_s7 + $0x18] sm:$0xff] %v1354_v54  ;;  %v1314_v62 = vpop.f32.mrf.mxu2  ;;  %v1327_v63 = vpop.f32.mrf.mxu3 }
 0x245   :  { %v1315_v1 = vadd.f32 %v1314_v62, %v920_v61 }
 0x247   :  { %v1328_v2 = vadd.f32 %v1327_v63, %v1315_v1  ;;  %v1342_v6 = vpop.f32.mrf.mxu0  ;;  %v1355_v7 = vpop.f32.mrf.mxu1 }
 0x249   :  { %1359 = vst [vmem:[%s2320_s7 + $0x10] sm:$0xff] %v1328_v2 }
 0x24c   :  { %v1316_v8 = vpop.f32.mrf.mxu2  ;;  %v1329_v9 = vpop.f32.mrf.mxu3 }
 0x24d   :  { %1365 = vsyncpa [#allocation4], 1 }
 0x24e   :  { %1366 = vsyncpa [#allocation6], 1 }

</bundles_post_ra>
